<compile_context>
chip_gen: v5e
topology: v5e:2x2
jax: 0.10.0
libtpu: 0.0.40
codegen_flags: <defaults>
</compile_context>

<pallas_src>
import functools

import jax
import jax.numpy as jnp
from jax.experimental import pallas as pl
from jax.experimental.pallas import tpu as pltpu

BN_EPS = 1e-5
NEG_SLOPE = 0.01
LANE = 128


def _round_up(x, m):
    return (x + m - 1) // m * m


def _edge_linear_kernel(x_ref, w_ref, b_ref, o_ref):
    # Linear (BN already folded into W / b by the wrapper) + LeakyReLU.
    y = jnp.dot(x_ref[...], w_ref[...], preferred_element_type=jnp.float32)
    y = y + b_ref[...]
    o_ref[...] = jnp.where(y > 0, y, NEG_SLOPE * y).astype(o_ref.dtype)


@functools.partial(jax.jit, static_argnames=("tm",))
def _edge_linear_pallas(x, w, b, *, tm):
    n, in_p = x.shape
    out_p = w.shape[1]
    grid = (pl.cdiv(n, tm),)
    cost = pl.CostEstimate(
        flops=2 * n * in_p * out_p,
        transcendentals=0,
        bytes_accessed=4 * (n * in_p + in_p * out_p + n * out_p),
    )
    return pl.pallas_call(
        _edge_linear_kernel,
        out_shape=jax.ShapeDtypeStruct((n, out_p), jnp.float32),
        grid_spec=pltpu.PrefetchScalarGridSpec(
            num_scalar_prefetch=0,
            grid=grid,
            in_specs=[
                pl.BlockSpec((tm, in_p), lambda i: (i, 0)),     # x row tile
                pl.BlockSpec((in_p, out_p), lambda i: (0, 0)),  # folded W (resident)
                pl.BlockSpec((1, out_p), lambda i: (0, 0)),     # folded bias
            ],
            out_specs=pl.BlockSpec((tm, out_p), lambda i: (i, 0)),
        ),
        compiler_params=pltpu.CompilerParams(
            dimension_semantics=("parallel",),       # row axis splits across TCs (v7x)
            vmem_limit_bytes=64 * 1024 * 1024,
        ),
        cost_estimate=cost,
    )(x, w, b)


def edge_linear(x, params, *, batch_normalize=True, tm=512, use_bf16=False):
    """Forward pass of EdgeLinear. Returns None for empty input (like PyTorch)."""
    if x.shape[0] == 0:
        return None
    w, b, gamma, beta, mean, var = params
    n, in_lin = x.shape
    out_lin = w.shape[1]

    # Fold BatchNorm1d (inference) into the linear layer:
    #   ((x@W + b) - mean) * gamma * rsqrt(var+eps) + beta
    #     = x @ (W * s) + ((b - mean) * s + beta),   s = gamma * rsqrt(var+eps)
    if batch_normalize:
        scale = gamma * jax.lax.rsqrt(var + BN_EPS)          # [1, out_lin]
        w_eff = w * scale                                    # per-output-column scale
        b_eff = (b - mean) * scale + beta
    else:
        w_eff, b_eff = w, b

    # Lane-dense padding: feature dims to multiples of 128. Zero-padded input
    # columns hit zero-padded weight rows (no contribution); padded output
    # columns get bias 0 and are sliced off below.
    in_p = _round_up(in_lin, LANE)
    out_p = _round_up(out_lin, LANE)
    if in_p != in_lin:
        x = jnp.pad(x, ((0, 0), (0, in_p - in_lin)))
        w_eff = jnp.pad(w_eff, ((0, in_p - in_lin), (0, 0)))
    if out_p != out_lin:
        w_eff = jnp.pad(w_eff, ((0, 0), (0, out_p - out_lin)))
        b_eff = jnp.pad(b_eff, ((0, 0), (0, out_p - out_lin)))

    if use_bf16:
        # bf16 MXU path (v6e/v7x): halves HBM traffic; accumulation stays f32.
        x = x.astype(jnp.bfloat16)
        w_eff = w_eff.astype(jnp.bfloat16)
    b_eff = b_eff.astype(jnp.float32)

    # Row tile: large for pipeline/MXU efficiency, multiple of 8 (sublane),
    # clamped so tiny batches don't allocate a huge block.
    tm_eff = min(tm, _round_up(n, 8))

    out = _edge_linear_pallas(x, w_eff, b_eff, tm=tm_eff)
    return out[:, :out_lin] if out_p != out_lin else out


def init_params(key, in_lin, out_lin):
    """Deterministic parameter init (shapes from EdgeLinear.__init__)."""
    k_w, k_b, k_g, k_be, k_m, k_v = jax.random.split(key, 6)
    bound = 1.0 / jnp.sqrt(in_lin)
    w = jax.random.uniform(k_w, (in_lin, out_lin), jnp.float32, -bound, bound)
    b = jax.random.uniform(k_b, (1, out_lin), jnp.float32, -bound, bound)
    gamma = jax.random.uniform(k_g, (1, out_lin), jnp.float32, 0.5, 1.5)
    beta = jax.random.uniform(k_be, (1, out_lin), jnp.float32, -0.5, 0.5)
    mean = jax.random.normal(k_m, (1, out_lin), jnp.float32) * 0.1
    var = jax.random.uniform(k_v, (1, out_lin), jnp.float32, 0.5, 1.5)
    return w, b, gamma, beta, mean, var


def _reference(x, params, *, batch_normalize=True):
    """Unfused reference matching the PyTorch op order."""
    w, b, gamma, beta, mean, var = params
    y = x @ w + b
    if batch_normalize:
        y = (y - mean) * jax.lax.rsqrt(var + BN_EPS) * gamma + beta
    return jnp.where(y > 0, y, NEG_SLOPE * y)


if __name__ == "__main__":
    key = jax.random.PRNGKey(0)
    k_x, k_x2, k_p = jax.random.split(key, 3)

    IN_LIN, OUT_LIN = 32, 32
    params = init_params(k_p, IN_LIN, OUT_LIN)

    # Small edge-feature batch ([num_edges, in_lin] as the module expects).
    x_small = jax.random.normal(k_x, (8, IN_LIN), jnp.float32)
    out = jax.block_until_ready(edge_linear(x_small, params, batch_normalize=True))
    ref = _reference(x_small, params, batch_normalize=True)
    assert out.shape == (8, OUT_LIN)
    assert jnp.allclose(out, ref, atol=1e-5, rtol=1e-5), "BN-folded mismatch"

    # Multi-step grid with ragged tail (300 rows, tm=128 -> 3 steps, 44-row tail).
    x_big = jax.random.normal(k_x2, (300, IN_LIN), jnp.float32)
    out_big = jax.block_until_ready(edge_linear(x_big, params, tm=128))
    ref_big = _reference(x_big, params, batch_normalize=True)
    assert out_big.shape == (300, OUT_LIN)
    assert jnp.allclose(out_big, ref_big, atol=1e-5, rtol=1e-5), "tail mismatch"

    # batch_normalize=False path (pure Linear + LeakyReLU, no BN hack).
    out_nobn = jax.block_until_ready(
        edge_linear(x_small, params, batch_normalize=False))
    ref_nobn = _reference(x_small, params, batch_normalize=False)
    assert jnp.allclose(out_nobn, ref_nobn, atol=1e-5, rtol=1e-5), "no-BN mismatch"

    # Optional bf16 matmul path (v6e/v7x): looser tolerance for input rounding.
    out_bf16 = jax.block_until_ready(
        edge_linear(x_big, params, tm=128, use_bf16=True))
    assert jnp.allclose(out_bf16, ref_big, atol=5e-2, rtol=5e-2), "bf16 mismatch"

    # Empty-input branch behaves like the PyTorch module (returns None).
    assert edge_linear(jnp.zeros((0, IN_LIN), jnp.float32), params) is None

    print("KERNEL_OK")
</pallas_src>

<mosaic_0001>
module attributes {stable_mosaic.version = 11 : i64} {
  func.func @_edge_linear_kernel(%arg0: i32, %arg1: memref<8x128xf32, #tpu.memory_space<vmem>>, %arg2: memref<128x128xf32, #tpu.memory_space<vmem>>, %arg3: memref<1x128xf32, #tpu.memory_space<vmem>>, %arg4: memref<8x128xf32, #tpu.memory_space<vmem>>) attributes {dimension_semantics = [#tpu.dimension_semantics<parallel>], iteration_bounds = array<i64: 1>, scalar_prefetch = 0 : i64, scratch_operands = 0 : i64, tpu.core_type = #tpu.core_type<tc>, window_params = [{transform_indices = @transform_0, window_bounds = array<i64: 8, 128>}, {pipeline_mode = #tpu.pipeline_mode<synchronous>, transform_indices = @transform_1, window_bounds = array<i64: 128, 128>}, {pipeline_mode = #tpu.pipeline_mode<synchronous>, transform_indices = @transform_2, window_bounds = array<i64: 1, 128>}, {transform_indices = @transform_3, window_bounds = array<i64: 8, 128>}]} {
    %c0 = arith.constant 0 : index
    %c0_0 = arith.constant 0 : index
    %0 = vector.load %arg1[%c0, %c0_0] : memref<8x128xf32, #tpu.memory_space<vmem>>, vector<8x128xf32>
    %c0_1 = arith.constant 0 : index
    %c0_2 = arith.constant 0 : index
    %1 = vector.load %arg2[%c0_1, %c0_2] : memref<128x128xf32, #tpu.memory_space<vmem>>, vector<128x128xf32>
    %cst = arith.constant dense<0.000000e+00> : vector<8x128xf32>
    %2 = tpu.matmul %0, %1, %cst {dimension_numbers = #tpu.dot_dimension_numbers<[1], [0], [0], [1], [0, 0, 1, 1], [], []>} : vector<8x128xf32>, vector<128x128xf32>, vector<8x128xf32> -> vector<8x128xf32>
    %c0_3 = arith.constant 0 : index
    %c0_4 = arith.constant 0 : index
    %3 = vector.load %arg3[%c0_3, %c0_4] : memref<1x128xf32, #tpu.memory_space<vmem>>, vector<1x128xf32>
    %4 = vector.broadcast %3 : vector<1x128xf32> to vector<8x128xf32>
    %5 = arith.addf %2, %4 : vector<8x128xf32>
    %cst_5 = arith.constant 0.000000e+00 : f32
    %6 = vector.broadcast %cst_5 : f32 to vector<8x128xf32>
    %7 = arith.cmpf ogt, %5, %6 : vector<8x128xf32>
    %cst_6 = arith.constant 0.00999999977 : f32
    %8 = vector.broadcast %cst_6 : f32 to vector<8x128xf32>
    %9 = arith.mulf %8, %5 : vector<8x128xf32>
    %10 = arith.select %7, %5, %9 : vector<8x128xi1>, vector<8x128xf32>
    %c0_7 = arith.constant 0 : index
    %c0_8 = arith.constant 0 : index
    %11 = vector.load %arg4[%c0_7, %c0_8] : memref<8x128xf32, #tpu.memory_space<vmem>>, vector<8x128xf32>
    tpu.vector_store %arg4[%c0_7, %c0_8], %10 {strides = array<i32>} : memref<8x128xf32, #tpu.memory_space<vmem>>, vector<8x128xf32>,
    return
  }
  func.func @transform_0(%arg0: i32) -> (i32, i32) {
    %c0_i32 = arith.constant 0 : i32
    %c0_i32_0 = arith.constant 0 : i32
    return %arg0, %c0_i32 : i32, i32
  }
  func.func @transform_1(%arg0: i32) -> (i32, i32) {
    %c0_i32 = arith.constant 0 : i32
    %c0_i32_0 = arith.constant 0 : i32
    %c0_i32_1 = arith.constant 0 : i32
    return %c0_i32, %c0_i32_0 : i32, i32
  }
  func.func @transform_2(%arg0: i32) -> (i32, i32) {
    %c0_i32 = arith.constant 0 : i32
    %c0_i32_0 = arith.constant 0 : i32
    %c0_i32_1 = arith.constant 0 : i32
    return %c0_i32, %c0_i32_0 : i32, i32
  }
  func.func @transform_3(%arg0: i32) -> (i32, i32) {
    %c0_i32 = arith.constant 0 : i32
    %c0_i32_0 = arith.constant 0 : i32
    return %arg0, %c0_i32 : i32, i32
  }
}

</mosaic_0001>

<bundles_post_ra>
// kernel: _edge_linear_pallas.1
= control target key start
LH: loop header
LB: loop body
LE: loop exit
PB: predicated region body
PF: predicated region fallthrough
CT: control target
= control target key end

     0   :  { %8 = vsyncpa [#allocation3], 0  ;;  %s229_s0 = inlined_call_operand.hbm [shape: f32[8,128], index: 0, kind: input, shape index: {}]   ;;  %s230_s1 = inlined_call_operand.hbm [shape: f32[128,128], index: 1, kind: input, shape index: {}]   ;;  %s231_s2 = inlined_call_operand.vmem [shape: f32[1,128], index: 2, kind: input, shape index: {}]   ;;  %s232_s3 = inlined_call_operand.hbm [shape: f32[8,128], index: 3, kind: output, shape index: {}]  }
   0x1   :  { %9 = vsyncpa [#allocation6], 0 }
   0x2   :  { %10 = vsyncpa [#allocation4], 0  ;;  %s16_s14 = sshll.u32 %s229_s0, 4  ;;  %s192_s15 = smov [#allocation2]   ;;  %s17_s14 = int_to_ptr.hbm [resolvable:$true] %s16_s14 }
   0x3   :  { %s18_s16 = sshll.u32 %s192_s15, 4  ;;  %s26_s19 = sshll.u32 %s230_s1, 4  ;;  %s19_s16 = int_to_ptr.vmem [resolvable:$true] %s18_s16  ;;  %s27_s19 = int_to_ptr.hbm [resolvable:$true] %s26_s19 }
   0x4   :  { %21 = dma.hbm_to_vmem [thread:$0]  %s17_s14, 128, %s19_s16, [#allocation3]  }
   0x5   :  { %s193_s20 = smov [#allocation5]   ;;  %s194_s22 = smov 128  }
   0x6   :  { %s28_s21 = sshll.u32 %s193_s20, 4  ;;  %s195_s23 = smov 8   ;;  %s29_s21 = int_to_ptr.vmem [resolvable:$true] %s28_s21 }
   0x7   :  { %34 = dma.hbm_to_vmem [thread:$0]  %s27_s19, 2048, %s29_s21, [#allocation6], %s194_s22, %s194_s22, %s195_s23  }
   0x8   :  { %186 = dma.done.wait [#allocation3], 128  }
   0x9   :  { %187 = vsyncadd [#allocation3], 4294967168 }
   0xa   :  { %188 = dma.done.wait [#allocation6], 2048  }
   0xb   :  { %189 = vsyncadd [#allocation6], 4294965248  ;;  %v61_v0 = vld [vmem:[#allocation5 + $0x78] sm:$0xff]  ;;  %v60_v1 = vld [vmem:[#allocation5 + $0x70] sm:$0xff]  ;;  %s196_s24 = smov [#allocation7]   ;;  %s97_s28 = sshll.u32 %s232_s3, 4  ;;  %s98_s28 = int_to_ptr.hbm [resolvable:$true] %s97_s28 }
   0xc   :  { %66 = vmatpush.msra.mxu0 %v61_v0  ;;  %v59_v2 = vld [vmem:[#allocation5 + $0x68] sm:$0xff]  ;;  %v58_v3 = vld [vmem:[#allocation5 + $0x60] sm:$0xff]  ;;  %v57_v4 = vld [vmem:[#allocation5 + $0x58] sm:$0xff]  ;;  %s95_s25 = sshll.u32 %s196_s24, 4  ;;  %s96_s25 = int_to_ptr.vmem [resolvable:$true] %s95_s25 }
   0xd   :  { %v56_v5 = vld [vmem:[#allocation5 + $0x50] sm:$0xff]  ;;  %v55_v6 = vld [vmem:[#allocation5 + $0x48] sm:$0xff]  ;;  %v54_v7 = vld [vmem:[#allocation5 + $0x40] sm:$0xff] }
   0xe   :  { %67 = vmatpush.msra.mxu0 %v60_v1  ;;  %v53_v8 = vld [vmem:[#allocation5 + $0x38] sm:$0xff]  ;;  %v52_v9 = vld [vmem:[#allocation5 + $0x30] sm:$0xff]  ;;  %v51_v10 = vld [vmem:[#allocation5 + $0x28] sm:$0xff] }
   0xf   :  { %v50_v11 = vld [vmem:[#allocation5 + $0x20] sm:$0xff]  ;;  %v49_v12 = vld [vmem:[#allocation5 + $0x18] sm:$0xff]  ;;  %v48_v13 = vld [vmem:[#allocation5 + $0x10] sm:$0xff] }
  0x10   :  { %68 = vmatpush.msra.mxu0 %v59_v2  ;;  %v47_v14 = vld [vmem:[#allocation5 + $0x8] sm:$0xff]  ;;  %v46_v15 = vld [vmem:[#allocation5] sm:$0xff]  ;;  %v45_v16 = vld [vmem:[#allocation2] sm:$0xff] }
  0x11   :  { %v113_v17 = vld [vmem:[%s231_s2] ss:$0 sm:$0xff] }
  0x12   :  { %69 = vmatpush.msra.mxu0 %v58_v3 }
  0x14   :  { %70 = vmatpush.msra.mxu0 %v57_v4 }
  0x16   :  { %71 = vmatpush.msra.mxu0 %v56_v5 }
  0x18   :  { %72 = vmatpush.msra.mxu0 %v55_v6 }
  0x1a   :  { %73 = vmatpush.msra.mxu0 %v54_v7 }
  0x1c   :  { %74 = vmatpush.msra.mxu0 %v53_v8 }
  0x1e   :  { %75 = vmatpush.msra.mxu0 %v52_v9 }
  0x20   :  { %76 = vmatpush.msra.mxu0 %v51_v10 }
  0x22   :  { %77 = vmatpush.msra.mxu0 %v50_v11 }
  0x24   :  { %78 = vmatpush.msra.mxu0 %v49_v12 }
  0x26   :  { %79 = vmatpush.msra.mxu0 %v48_v13 }
  0x28   :  { %80 = vmatpush.msra.mxu0 %v47_v14 }
  0x2a   :  { %81 = vmatpush.msra.mxu0 %v46_v15 }
  0x2b   :  { %82 = vmatmul.f32.vlgmr.msra.gmra.mxu0 %v45_v16 }
  0xa8   :  { %v83_v18 = vpop.f32.mrf.mxu0 }
  0xa9   :  { %v84_v19 = vadd.f32 %v113_v17, %v83_v18 }
  0xab   :  { %vm86_vm0 = vcmp.gt.f32.partialorder %v84_v19, 0.0  ;;  %v87_v20 = vmul.f32 0.01, %v84_v19 }
  0xad   :  { %v88_v21 = vsel %vm86_vm0, %v84_v19, %v87_v20 }
  0xae   :  { %89 = vst [vmem:[#allocation7] sm:$0xff] %v88_v21 }
  0xaf   :  { %100 = dma.vmem_to_hbm [thread:$0]  %s96_s25, 128, %s98_s28, [#allocation4]  }
  0xb0   :  { %190 = dma.done.wait [#allocation4], 128  }
  0xb1   :  { %191 = vsyncadd [#allocation4], 4294967168 }
  0xb2   :  { %105 = vsyncpa [#allocation3], 1 }
  0xb3   :  { %106 = vsyncpa [#allocation6], 1 }
  0xb4   :  { %107 = vsyncpa [#allocation4], 1 }

</bundles_post_ra>
